<compile_context>
chip_gen: v6e
topology: v6e:2x2x1
jax: 0.10.0
libtpu: 0.0.40
codegen_flags: <defaults>
</compile_context>

<pallas_src>
import jax
import jax.numpy as jnp
from jax.experimental import pallas as pl
from jax.experimental.pallas import tpu as pltpu

_HID = (128, 64, 32)
_OUT = 3
_OUT_PAD = 128  # lane-dense padded output width (multiple of 128)


def _round_up(n, m):
    return ((n + m - 1) // m) * m


def _mlp_kernel(x_ref,
                w1_ref, b1_ref,
                w2_ref, b2_ref,
                w3_ref, b3_ref,
                w4_ref, b4_ref,
                o_ref):
    """One batch tile: 4 MXU matmuls (bf16 in, f32 acc) + bias + ReLU epilogues."""
    x = x_ref[...]                                                        # (TILE_B, F) bf16
    h = jnp.dot(x, w1_ref[...], preferred_element_type=jnp.float32) + b1_ref[...]
    h = jnp.maximum(h, 0.0).astype(jnp.bfloat16)
    h = jnp.dot(h, w2_ref[...], preferred_element_type=jnp.float32) + b2_ref[...]
    h = jnp.maximum(h, 0.0).astype(jnp.bfloat16)
    h = jnp.dot(h, w3_ref[...], preferred_element_type=jnp.float32) + b3_ref[...]
    h = jnp.maximum(h, 0.0).astype(jnp.bfloat16)
    out = jnp.dot(h, w4_ref[...], preferred_element_type=jnp.float32) + b4_ref[...]
    o_ref[...] = out.astype(o_ref.dtype)                                  # lane-dense (TILE_B, 128) store


def match_predictor_forward(x, kp, *, tile_b=512):
    """x: (B, input_size) float32. kp: folded/padded kernel params (see fold_params)."""
    B, F = x.shape
    # Tile the batch: multiple of 16 (bf16 sublane packing); cap so VMEM stays tiny.
    tile_b = min(tile_b, max(16, _round_up(B, 16)))
    Bp = _round_up(B, tile_b)
    if Bp != B:
        x = jnp.pad(x, ((0, Bp - B), (0, 0)))
    x = x.astype(jnp.bfloat16)

    w1, b1 = kp["w1"], kp["b1"]
    w2, b2 = kp["w2"], kp["b2"]
    w3, b3 = kp["w3"], kp["b3"]
    w4, b4 = kp["w4"], kp["b4"]

    const = lambda i: (0, 0)   # weights/biases: same block every grid step -> VMEM resident
    grid = (Bp // tile_b,)

    flops = 2 * Bp * (F * _HID[0] + _HID[0] * _HID[1] + _HID[1] * _HID[2] + _HID[2] * _OUT_PAD)
    bytes_accessed = (Bp * F * 2 + Bp * _OUT_PAD * 4
                      + sum(int(w.size) * 2 for w in (w1, w2, w3, w4))
                      + sum(int(b.size) * 4 for b in (b1, b2, b3, b4)))

    out = pl.pallas_call(
        _mlp_kernel,
        out_shape=jax.ShapeDtypeStruct((Bp, _OUT_PAD), jnp.float32),
        grid_spec=pltpu.PrefetchScalarGridSpec(
            num_scalar_prefetch=0,
            grid=grid,
            in_specs=[
                pl.BlockSpec((tile_b, F), lambda i: (i, 0)),
                pl.BlockSpec(w1.shape, const), pl.BlockSpec(b1.shape, const),
                pl.BlockSpec(w2.shape, const), pl.BlockSpec(b2.shape, const),
                pl.BlockSpec(w3.shape, const), pl.BlockSpec(b3.shape, const),
                pl.BlockSpec(w4.shape, const), pl.BlockSpec(b4.shape, const),
            ],
            out_specs=pl.BlockSpec((tile_b, _OUT_PAD), lambda i: (i, 0)),
        ),
        compiler_params=pltpu.CompilerParams(
            dimension_semantics=("parallel",)),
        cost_estimate=pl.CostEstimate(
            flops=flops, transcendentals=0, bytes_accessed=bytes_accessed),
    )(x, w1, b1, w2, b2, w3, b3, w4, b4)
    return out[:B, :_OUT]


def init_params(key, input_size):
    """PyTorch-like raw parameters (Linear weights stored (in, out); BN running stats)."""
    dims = [(input_size, _HID[0]), (_HID[0], _HID[1]), (_HID[1], _HID[2]), (_HID[2], _OUT)]
    keys = jax.random.split(key, 16)
    ki = 0
    raw = {}
    for li, (fan_in, fan_out) in enumerate(dims, start=1):
        bound = 1.0 / (fan_in ** 0.5)
        raw[f"w{li}"] = jax.random.uniform(
            keys[ki], (fan_in, fan_out), jnp.float32, -bound, bound); ki += 1
        raw[f"b{li}"] = jax.random.uniform(
            keys[ki], (1, fan_out), jnp.float32, -bound, bound); ki += 1
        if li < 4:  # BatchNorm1d after the first three Linear layers
            raw[f"gamma{li}"] = 1.0 + 0.1 * jax.random.normal(keys[ki], (1, fan_out), jnp.float32); ki += 1
            raw[f"beta{li}"] = 0.1 * jax.random.normal(keys[ki], (1, fan_out), jnp.float32); ki += 1
            raw[f"mean{li}"] = 0.05 * jnp.arange(fan_out, dtype=jnp.float32).reshape(1, fan_out)
            raw[f"var{li}"] = 1.0 + 0.01 * jnp.arange(fan_out, dtype=jnp.float32).reshape(1, fan_out)
    return raw


def fold_params(raw, eps=1e-5):
    """Fold BN(running stats) into Linear (w' = w*s, b' = b*s + t), pad head to 128 lanes,
    cast weights to bf16 for the MXU (biases stay f32 for the f32 epilogue)."""
    kp = {}
    for li in (1, 2, 3):
        scale = raw[f"gamma{li}"] / jnp.sqrt(raw[f"var{li}"] + eps)        # (1, out)
        shift = raw[f"beta{li}"] - raw[f"mean{li}"] * scale
        kp[f"w{li}"] = (raw[f"w{li}"] * scale).astype(jnp.bfloat16)
        kp[f"b{li}"] = raw[f"b{li}"] * scale + shift
    w4 = jnp.zeros((raw["w4"].shape[0], _OUT_PAD), jnp.float32).at[:, :_OUT].set(raw["w4"])
    b4 = jnp.zeros((1, _OUT_PAD), jnp.float32).at[:, :_OUT].set(raw["b4"])
    kp["w4"] = w4.astype(jnp.bfloat16)
    kp["b4"] = b4
    return kp


def reference_forward(x, kp):
    """Plain-JAX reference with matching numerics (bf16 operands, f32 accumulation)."""
    hi = jax.lax.Precision.HIGHEST
    f32 = lambda a: a.astype(jnp.float32)
    h = f32(x.astype(jnp.bfloat16))
    for li in (1, 2, 3):
        h = jnp.dot(h, f32(kp[f"w{li}"]), precision=hi) + kp[f"b{li}"]
        h = f32(jnp.maximum(h, 0.0).astype(jnp.bfloat16))
    out = jnp.dot(h, f32(kp["w4"]), precision=hi) + kp["b4"]
    return out[:, :_OUT]


if __name__ == "__main__":
    key = jax.random.PRNGKey(0)
    k_x, k_p = jax.random.split(key)

    batch = 8
    input_size = 32
    x = jax.random.normal(k_x, (batch, input_size), jnp.float32)
    raw = init_params(k_p, input_size)
    kp = fold_params(raw)

    out = match_predictor_forward(x, kp)
    out = jax.block_until_ready(out)

    ref = reference_forward(x, kp)
    assert out.shape == (batch, _OUT)
    assert jnp.allclose(out, ref, atol=2e-3, rtol=2e-3), "mismatch vs reference"

    print("KERNEL_OK")
</pallas_src>

<mosaic_0001>
module attributes {stable_mosaic.version = 11 : i64} {
  func.func @_mlp_kernel(%arg0: i32, %arg1: memref<16x32xbf16, #tpu.memory_space<vmem>>, %arg2: memref<32x128xbf16, #tpu.memory_space<vmem>>, %arg3: memref<1x128xf32, #tpu.memory_space<vmem>>, %arg4: memref<128x64xbf16, #tpu.memory_space<vmem>>, %arg5: memref<1x64xf32, #tpu.memory_space<vmem>>, %arg6: memref<64x32xbf16, #tpu.memory_space<vmem>>, %arg7: memref<1x32xf32, #tpu.memory_space<vmem>>, %arg8: memref<32x128xbf16, #tpu.memory_space<vmem>>, %arg9: memref<1x128xf32, #tpu.memory_space<vmem>>, %arg10: memref<16x128xf32, #tpu.memory_space<vmem>>) attributes {dimension_semantics = [#tpu.dimension_semantics<parallel>], iteration_bounds = array<i64: 1>, scalar_prefetch = 0 : i64, scratch_operands = 0 : i64, tpu.core_type = #tpu.core_type<tc>, window_params = [{transform_indices = @transform_0, window_bounds = array<i64: 16, 32>}, {pipeline_mode = #tpu.pipeline_mode<synchronous>, transform_indices = @transform_1, window_bounds = array<i64: 32, 128>}, {pipeline_mode = #tpu.pipeline_mode<synchronous>, transform_indices = @transform_2, window_bounds = array<i64: 1, 128>}, {pipeline_mode = #tpu.pipeline_mode<synchronous>, transform_indices = @transform_3, window_bounds = array<i64: 128, 64>}, {pipeline_mode = #tpu.pipeline_mode<synchronous>, transform_indices = @transform_4, window_bounds = array<i64: 1, 64>}, {pipeline_mode = #tpu.pipeline_mode<synchronous>, transform_indices = @transform_5, window_bounds = array<i64: 64, 32>}, {pipeline_mode = #tpu.pipeline_mode<synchronous>, transform_indices = @transform_6, window_bounds = array<i64: 1, 32>}, {pipeline_mode = #tpu.pipeline_mode<synchronous>, transform_indices = @transform_7, window_bounds = array<i64: 32, 128>}, {pipeline_mode = #tpu.pipeline_mode<synchronous>, transform_indices = @transform_8, window_bounds = array<i64: 1, 128>}, {transform_indices = @transform_9, window_bounds = array<i64: 16, 128>}]} {
    %c0 = arith.constant 0 : index
    %c0_0 = arith.constant 0 : index
    %0 = vector.load %arg1[%c0, %c0_0] : memref<16x32xbf16, #tpu.memory_space<vmem>>, vector<16x32xbf16>
    %c0_1 = arith.constant 0 : index
    %c0_2 = arith.constant 0 : index
    %1 = vector.load %arg2[%c0_1, %c0_2] : memref<32x128xbf16, #tpu.memory_space<vmem>>, vector<32x128xbf16>
    %cst = arith.constant dense<0.000000e+00> : vector<16x128xf32>
    %2 = tpu.matmul %0, %1, %cst {dimension_numbers = #tpu.dot_dimension_numbers<[1], [0], [0], [1], [0, 0, 1, 1], [], []>} : vector<16x32xbf16>, vector<32x128xbf16>, vector<16x128xf32> -> vector<16x128xf32>
    %c0_3 = arith.constant 0 : index
    %c0_4 = arith.constant 0 : index
    %3 = vector.load %arg3[%c0_3, %c0_4] : memref<1x128xf32, #tpu.memory_space<vmem>>, vector<1x128xf32>
    %4 = vector.broadcast %3 : vector<1x128xf32> to vector<16x128xf32>
    %5 = arith.addf %2, %4 : vector<16x128xf32>
    %cst_5 = arith.constant 0.000000e+00 : f32
    %6 = vector.broadcast %cst_5 : f32 to vector<16x128xf32>
    %7 = arith.maximumf %5, %6 : vector<16x128xf32>
    %8 = arith.truncf %7 : vector<16x128xf32> to vector<16x128xbf16>
    %c0_6 = arith.constant 0 : index
    %c0_7 = arith.constant 0 : index
    %9 = vector.load %arg4[%c0_6, %c0_7] : memref<128x64xbf16, #tpu.memory_space<vmem>>, vector<128x64xbf16>
    %cst_8 = arith.constant dense<0.000000e+00> : vector<16x64xf32>
    %10 = tpu.matmul %8, %9, %cst_8 {dimension_numbers = #tpu.dot_dimension_numbers<[1], [0], [0], [1], [0, 0, 1, 1], [], []>} : vector<16x128xbf16>, vector<128x64xbf16>, vector<16x64xf32> -> vector<16x64xf32>
    %c0_9 = arith.constant 0 : index
    %c0_10 = arith.constant 0 : index
    %11 = vector.load %arg5[%c0_9, %c0_10] : memref<1x64xf32, #tpu.memory_space<vmem>>, vector<1x64xf32>
    %12 = vector.broadcast %11 : vector<1x64xf32> to vector<16x64xf32>
    %13 = arith.addf %10, %12 : vector<16x64xf32>
    %cst_11 = arith.constant 0.000000e+00 : f32
    %14 = vector.broadcast %cst_11 : f32 to vector<16x64xf32>
    %15 = arith.maximumf %13, %14 : vector<16x64xf32>
    %16 = arith.truncf %15 : vector<16x64xf32> to vector<16x64xbf16>
    %c0_12 = arith.constant 0 : index
    %c0_13 = arith.constant 0 : index
    %17 = vector.load %arg6[%c0_12, %c0_13] : memref<64x32xbf16, #tpu.memory_space<vmem>>, vector<64x32xbf16>
    %cst_14 = arith.constant dense<0.000000e+00> : vector<16x32xf32>
    %18 = tpu.matmul %16, %17, %cst_14 {dimension_numbers = #tpu.dot_dimension_numbers<[1], [0], [0], [1], [0, 0, 1, 1], [], []>} : vector<16x64xbf16>, vector<64x32xbf16>, vector<16x32xf32> -> vector<16x32xf32>
    %c0_15 = arith.constant 0 : index
    %c0_16 = arith.constant 0 : index
    %19 = vector.load %arg7[%c0_15, %c0_16] : memref<1x32xf32, #tpu.memory_space<vmem>>, vector<1x32xf32>
    %20 = vector.broadcast %19 : vector<1x32xf32> to vector<16x32xf32>
    %21 = arith.addf %18, %20 : vector<16x32xf32>
    %cst_17 = arith.constant 0.000000e+00 : f32
    %22 = vector.broadcast %cst_17 : f32 to vector<16x32xf32>
    %23 = arith.maximumf %21, %22 : vector<16x32xf32>
    %24 = arith.truncf %23 : vector<16x32xf32> to vector<16x32xbf16>
    %c0_18 = arith.constant 0 : index
    %c0_19 = arith.constant 0 : index
    %25 = vector.load %arg8[%c0_18, %c0_19] : memref<32x128xbf16, #tpu.memory_space<vmem>>, vector<32x128xbf16>
    %cst_20 = arith.constant dense<0.000000e+00> : vector<16x128xf32>
    %26 = tpu.matmul %24, %25, %cst_20 {dimension_numbers = #tpu.dot_dimension_numbers<[1], [0], [0], [1], [0, 0, 1, 1], [], []>} : vector<16x32xbf16>, vector<32x128xbf16>, vector<16x128xf32> -> vector<16x128xf32>
    %c0_21 = arith.constant 0 : index
    %c0_22 = arith.constant 0 : index
    %27 = vector.load %arg9[%c0_21, %c0_22] : memref<1x128xf32, #tpu.memory_space<vmem>>, vector<1x128xf32>
    %28 = vector.broadcast %27 : vector<1x128xf32> to vector<16x128xf32>
    %29 = arith.addf %26, %28 : vector<16x128xf32>
    %c0_23 = arith.constant 0 : index
    %c0_24 = arith.constant 0 : index
    %30 = vector.load %arg10[%c0_23, %c0_24] : memref<16x128xf32, #tpu.memory_space<vmem>>, vector<16x128xf32>
    tpu.vector_store %arg10[%c0_23, %c0_24], %29 {strides = array<i32>} : memref<16x128xf32, #tpu.memory_space<vmem>>, vector<16x128xf32>,
    return
  }
  func.func @transform_0(%arg0: i32) -> (i32, i32) {
    %c0_i32 = arith.constant 0 : i32
    %c0_i32_0 = arith.constant 0 : i32
    return %arg0, %c0_i32 : i32, i32
  }
  func.func @transform_1(%arg0: i32) -> (i32, i32) {
    %c0_i32 = arith.constant 0 : i32
    %c0_i32_0 = arith.constant 0 : i32
    %c0_i32_1 = arith.constant 0 : i32
    return %c0_i32, %c0_i32_0 : i32, i32
  }
  func.func @transform_2(%arg0: i32) -> (i32, i32) {
    %c0_i32 = arith.constant 0 : i32
    %c0_i32_0 = arith.constant 0 : i32
    %c0_i32_1 = arith.constant 0 : i32
    return %c0_i32, %c0_i32_0 : i32, i32
  }
  func.func @transform_3(%arg0: i32) -> (i32, i32) {
    %c0_i32 = arith.constant 0 : i32
    %c0_i32_0 = arith.constant 0 : i32
    %c0_i32_1 = arith.constant 0 : i32
    return %c0_i32, %c0_i32_0 : i32, i32
  }
  func.func @transform_4(%arg0: i32) -> (i32, i32) {
    %c0_i32 = arith.constant 0 : i32
    %c0_i32_0 = arith.constant 0 : i32
    %c0_i32_1 = arith.constant 0 : i32
    return %c0_i32, %c0_i32_0 : i32, i32
  }
  func.func @transform_5(%arg0: i32) -> (i32, i32) {
    %c0_i32 = arith.constant 0 : i32
    %c0_i32_0 = arith.constant 0 : i32
    %c0_i32_1 = arith.constant 0 : i32
    return %c0_i32, %c0_i32_0 : i32, i32
  }
  func.func @transform_6(%arg0: i32) -> (i32, i32) {
    %c0_i32 = arith.constant 0 : i32
    %c0_i32_0 = arith.constant 0 : i32
    %c0_i32_1 = arith.constant 0 : i32
    return %c0_i32, %c0_i32_0 : i32, i32
  }
  func.func @transform_7(%arg0: i32) -> (i32, i32) {
    %c0_i32 = arith.constant 0 : i32
    %c0_i32_0 = arith.constant 0 : i32
    %c0_i32_1 = arith.constant 0 : i32
    return %c0_i32, %c0_i32_0 : i32, i32
  }
  func.func @transform_8(%arg0: i32) -> (i32, i32) {
    %c0_i32 = arith.constant 0 : i32
    %c0_i32_0 = arith.constant 0 : i32
    %c0_i32_1 = arith.constant 0 : i32
    return %c0_i32, %c0_i32_0 : i32, i32
  }
  func.func @transform_9(%arg0: i32) -> (i32, i32) {
    %c0_i32 = arith.constant 0 : i32
    %c0_i32_0 = arith.constant 0 : i32
    return %arg0, %c0_i32 : i32, i32
  }
}

</mosaic_0001>

<bundles_post_ra>
// kernel: tpu_custom_call.1
= control target key start
LH: loop header
LB: loop body
LE: loop exit
PB: predicated region body
PF: predicated region fallthrough
CT: control target
= control target key end

     0   :  { %v535_v1 = vmov 0.0   ;;  %vm536_vm0 = vmmov 0   ;;  %vm64_vm1 = vcmask 261120   ;;  %s682_s0 = inlined_call_operand.vmem [shape: bf16[16,32], index: 0, kind: input, shape index: {}]   ;;  %s683_s1 = inlined_call_operand.vmem [shape: bf16[32,128], index: 1, kind: input, shape index: {}]   ;;  %s684_s2 = inlined_call_operand.vmem [shape: f32[1,128], index: 2, kind: input, shape index: {}]   ;;  %s685_s3 = inlined_call_operand.vmem [shape: bf16[128,64], index: 3, kind: input, shape index: {}]   ;;  %s686_s4 = inlined_call_operand.vmem [shape: f32[1,64], index: 4, kind: input, shape index: {}]   ;;  %s687_s5 = inlined_call_operand.vmem [shape: bf16[64,32], index: 5, kind: input, shape index: {}]   ;;  %s688_s6 = inlined_call_operand.vmem [shape: f32[1,32], index: 6, kind: input, shape index: {}]   ;;  %s689_s7 = inlined_call_operand.vmem [shape: bf16[32,128], index: 7, kind: input, shape index: {}]   ;;  %s690_s8 = inlined_call_operand.vmem [shape: f32[1,128], index: 8, kind: input, shape index: {}]   ;;  %s691_s9 = inlined_call_operand.hbm [shape: f32[16,128], index: 9, kind: output, shape index: {}]  }
   0x1   :  { %v496_v0 = vld [vmem:[%s683_s1 + $0x8] sm:$0xff]   ;;  %443 = vmatprep.subr.bf16.mxu0 %v535_v1  ;;  %451 = vmatprep.subr.bf16.mxu1 %v535_v1  ;;  %v497_v2 = vld [vmem:[%s683_s1] sm:$0xff]   ;;  %v499_v3 = vld [vmem:[%s685_s3 + $0x38] sm:$0xff]  }
   0x2   :  { %444 = vmatpush3.bf16.msra.mxu0 %v496_v0  ;;  %447 = vmatprep.mubr.msk.bf16.mxu0 %vm536_vm0, %v535_v1  ;;  %v498_v4 = vld [vmem:[%s682_s0] sm:$0xff]   ;;  %v500_v5 = vld [vmem:[%s685_s3 + $0x30] sm:$0xff]   ;;  %v501_v6 = vld [vmem:[%s685_s3 + $0x28] sm:$0xff]  }
   0x3   :  { %445 = vmatprep.subr.bf16.mxu0 %v535_v1  ;;  %467 = vmatprep.mubr.msk.bf16.mxu1 %vm536_vm0, %v535_v1  ;;  %v502_v7 = vld [vmem:[%s685_s3 + $0x20] sm:$0xff]  }
   0x4   :  { %452 = vmatpush3.bf16.msra.mxu1 %v499_v3 }
   0x5   :  { %453 = vmatprep.subr.bf16.mxu1 %v535_v1 }
   0x6   :  { %446 = vmatpush3.bf16.msra.mxu0 %v497_v2 }
   0x7   :  { %471 = vmatprep.subr.bf16.mxu0 %v535_v1 }
   0x8   :  { %454 = vmatpush3.bf16.msra.mxu1 %v500_v5 }
   0x9   :  { %448 = vmatmul.mubr.msk.bf16.vlgmr.msra.gmra.mxu0 %vm64_vm1, %v498_v4  ;;  %455 = vmatprep.subr.bf16.mxu1 %v535_v1 }
   0xa   :  { %479 = vmatprep.mubr.msk.bf16.mxu0 %vm536_vm0, %v535_v1 }
   0xc   :  { %456 = vmatpush3.bf16.msra.mxu1 %v501_v6 }
   0xd   :  { %457 = vmatprep.subr.bf16.mxu1 %v535_v1 }
   0xe   :  { %14 = vsyncpa [#allocation3], 0  ;;  %v503_v8 = vld [vmem:[%s685_s3 + $0x18] sm:$0xff]   ;;  %v504_v9 = vld [vmem:[%s685_s3 + $0x10] sm:$0xff]   ;;  %vm266_vm2 = vcmask 523264  }
   0xf   :  { %v505_v10 = vld [vmem:[%s685_s3 + $0x8] sm:$0xff]   ;;  %v506_v11 = vld [vmem:[%s685_s3] sm:$0xff]   ;;  %v507_v12 = vld [vmem:[%s687_s5 + $0x18] sm:$0xff]  }
  0x10   :  { %458 = vmatpush3.bf16.msra.mxu1 %v502_v7  ;;  %472 = vmatpush3.bf16.msra.mxu0 %v507_v12  ;;  %v399_v13 = vld [vmem:[%s684_s2] ss:$0 sm:$0xff]  ;;  %v508_v23 = vld [vmem:[%s687_s5 + $0x10] sm:$0xff]   ;;  %v509_v24 = vld [vmem:[%s687_s5 + $0x8] sm:$0xff]  }
  0x11   :  { %459 = vmatprep.subr.bf16.mxu1 %v535_v1  ;;  %473 = vmatprep.subr.bf16.mxu0 %v535_v1  ;;  %v510_v25 = vld [vmem:[%s687_s5] sm:$0xff]   ;;  %v511_v36 = vld [vmem:[%s689_s7 + $0x8] sm:$0xff]  }
  0x12   :  { %v404_v26 = vld [vmem:[%s686_s4] ss:$0 sm:$0xff] }
  0x13   :  { %v512_v37 = vld [vmem:[%s689_s7] sm:$0xff]   ;;  %s537_s7 = smov [#allocation2]  }
  0x14   :  { %460 = vmatpush3.bf16.msra.mxu1 %v503_v8  ;;  %474 = vmatpush3.bf16.msra.mxu0 %v508_v23  ;;  %v413_v38 = vld [vmem:[%s688_s6] ss:$0 sm:$0xff]  ;;  %s388_s22 = sshll.u32 %s537_s7, 4  ;;  %s389_s22 = int_to_ptr.vmem [resolvable:$true] %s388_s22 }
  0x15   :  { %461 = vmatprep.subr.bf16.mxu1 %v535_v1  ;;  %475 = vmatprep.subr.bf16.mxu0 %v535_v1  ;;  %v419_v48 = vld [vmem:[%s690_s8] ss:$0 sm:$0xff]  ;;  %s513_s6 = scalar_lea.vmem %s389_s22, 256  ;;  %p518_p1 = scmp.lt.s32.totalorder %s389_s22, %s389_s22 }
  0x16   :  { %p514_p0 = scmp.ne.s32.totalorder %s389_s22, %s513_s6  ;;  %p519_p2 = scmp.lt.s32.totalorder %s513_s6, %s513_s6 }
  0x18   :  { %462 = vmatpush3.bf16.msra.mxu1 %v504_v9  ;;  %476 = vmatpush3.bf16.msra.mxu0 %v509_v24  ;;  %p520_p3 = por %p519_p2, %p518_p1 }
  0x19   :  { %463 = vmatprep.subr.bf16.mxu1 %v535_v1  ;;  %477 = vmatprep.subr.bf16.mxu0 %v535_v1 }
  0x1a   :  { %p521_p4 = pnand %p520_p3, %p514_p0 }
  0x1c   :  { %464 = vmatpush3.bf16.msra.mxu1 %v505_v10  ;;  %478 = vmatpush3.bf16.msra.mxu0 %v510_v25 }
  0x1d   :  { %465 = vmatprep.subr.bf16.mxu1 %v535_v1  ;;  %483 = vmatprep.subr.bf16.mxu0 %v535_v1 }
  0x20   :  { %466 = vmatpush3.bf16.msra.mxu1 %v506_v11 }
  0xc9   :  { %v102_v14 = vpop.f32.mrf.mxu0 }
  0xca   :  { %v103_v16 = vadd.f32 %v399_v13, %v102_v14 }
  0xcb   :  { %v449_v15 = vpop.f32.mrf.mxu0 }
  0xcc   :  { %v109_v20 = vmax.f32 %v103_v16, 0.0 }
  0xcd   :  { %v105_v17 = vpop.f32.mrf.mxu0 }
  0xce   :  { %v106_v18 = vadd.f32 %v399_v13, %v105_v17 }
  0xcf   :  { %v450_v19 = vpop.f32.mrf.mxu0 }
  0xd0   :  { %v110_v21 = vmax.f32 %v106_v18, 0.0 }
  0xd2   :  { %v111_v22 = vpack.c.bf16 %v110_v21, %v109_v20 }
  0xd4   :  { %468 = vmatmul.mubr.bf16.vlgmr.msra.gmra.mxu1 %v111_v22 }
 0x194   :  { %v217_v27 = vpop.f32.mrf.mxu1 }
 0x195   :  { %v218_v29 = vadd.f32 %v404_v26, %v217_v27 }
 0x196   :  { %v469_v28 = vpop.f32.mrf.mxu1 }
 0x197   :  { %v224_v33 = vmax.f32 %v218_v29, 0.0 }
 0x198   :  { %v220_v30 = vpop.f32.mrf.mxu1 }
 0x199   :  { %v221_v31 = vadd.f32 %v404_v26, %v220_v30 }
 0x19a   :  { %v470_v32 = vpop.f32.mrf.mxu1 }
 0x19b   :  { %v225_v34 = vmax.f32 %v221_v31, 0.0 }
 0x19d   :  { %v226_v35 = vpack.c.bf16 %v225_v34, %v224_v33 }
 0x19f   :  { %480 = vmatmul.mubr.msk.bf16.vlgmr.msra.gmra.mxu0 %vm266_vm2, %v226_v35 }
 0x1a0   :  { %487 = vmatprep.mubr.msk.bf16.mxu0 %vm536_vm0, %v535_v1  ;;  %484 = vmatpush3.bf16.msra.mxu0 %v511_v36 }
 0x1a1   :  { %485 = vmatprep.subr.bf16.mxu0 %v535_v1 }
 0x1a4   :  { %486 = vmatpush3.bf16.msra.mxu0 %v512_v37 }
 0x25f   :  { %v304_v39 = vpop.f32.mrf.mxu0 }
 0x260   :  { %v305_v41 = vadd.f32 %v413_v38, %v304_v39 }
 0x261   :  { %v481_v40 = vpop.f32.mrf.mxu0 }
 0x262   :  { %v311_v45 = vmax.f32 %v305_v41, 0.0 }
 0x263   :  { %v307_v42 = vpop.f32.mrf.mxu0 }
 0x264   :  { %v308_v43 = vadd.f32 %v413_v38, %v307_v42 }
 0x265   :  { %v482_v44 = vpop.f32.mrf.mxu0 }
 0x266   :  { %v312_v46 = vmax.f32 %v308_v43, 0.0 }
 0x268   :  { %v313_v47 = vpack.c.bf16 %v312_v46, %v311_v45 }
 0x26a   :  { %488 = vmatmul.mubr.msk.bf16.vlgmr.msra.gmra.mxu0 %vm64_vm1, %v313_v47 }
 0x32a   :  { %v374_v49 = vpop.f32.mrf.mxu0 }
 0x32b   :  { %v375_v50 = vadd.f32 %v419_v48, %v374_v49 }
 0x32c   :  { %v489_v51 = vpop.f32.mrf.mxu0 }
 0x32d   :  { %381 = vst [vmem:[#allocation2] sm:$0xff] %v375_v50 }
 0x32e   :  { %v377_v52 = vpop.f32.mrf.mxu0 }
 0x32f   :  { %v378_v53 = vadd.f32 %v419_v48, %v377_v52 }
 0x330   :  { %v490_v54 = vpop.f32.mrf.mxu0 }
 0x331   :  { %382 = vst [vmem:[#allocation2 + $0x8] sm:$0xff] %v378_v53 }
 0x332   :  { %524 = shalt.err (!%p521_p4)
}
 0x333   :  { %s538_s23 = smov 128   ;;  %s539_s8 = smov 8  }
 0x334   :  { %394 = dma.vmem_to_hbm [thread:$0]  %s389_s22, 256, %s691_s9, [#allocation3], %s538_s23, %s538_s23, %s539_s8  }
 0x335   :  { %533 = dma.done.wait [#allocation3], 256  }
 0x336   :  { %534 = vsyncadd [#allocation3], 4294967040 }
 0x337   :  { %398 = vsyncpa [#allocation3], 1 }

</bundles_post_ra>
